<compile_context>
chip_gen: v7x
topology: tpu7x:2x2x1
jax: 0.10.0
libtpu: 0.0.40
codegen_flags: <defaults>
</compile_context>

<pallas_src>
import numpy as np
import jax
import jax.numpy as jnp
from jax.experimental import pallas as pl
from jax.experimental.pallas import tpu as pltpu


def _build_channel_map(in_channels, out_channels):
    """Same mapping as the PyTorch __init__; later input channel wins on collision."""
    if in_channels > 0:
        spacing = out_channels / in_channels
        indices = [int(i * spacing) for i in range(in_channels)]
    else:
        indices = []
    src_map = {}
    for i, idx in enumerate(indices):
        src_map[idx] = i
    return src_map


def _make_channel_pad_kernel(src_map, out_channels):
    """Kernel with the (static) channel scatter baked in at trace time."""
    # Precompute copy / zero segments; contiguous unmapped output channels are
    # coalesced into one slab zero-store.
    segments = []
    oc = 0
    while oc < out_channels:
        if oc in src_map:
            segments.append(("copy", oc, src_map[oc]))
            oc += 1
        else:
            lo = oc
            while oc < out_channels and oc not in src_map:
                oc += 1
            segments.append(("zero", lo, oc))

    # TODO(synk): for out_channels in the hundreds, replace the unrolled
    # per-channel copies with a precomputed gather+mask (single dense store)
    # to bound Mosaic program size; unrolling is fine at small channel counts.
    def kernel(x_ref, o_ref):
        # x_ref: (1, C_in, t_rows, 128), o_ref: (1, C_out, t_rows, 128)
        t_rows, lanes = o_ref.shape[2], o_ref.shape[3]
        for seg in segments:
            if seg[0] == "copy":
                _, out_c, src_c = seg
                # Stream per-channel slices; each source channel is read once.
                o_ref[:, out_c, :, :] = x_ref[:, src_c, :, :].astype(o_ref.dtype)
            else:
                _, lo, hi = seg
                o_ref[:, lo:hi, :, :] = jnp.zeros(
                    (1, hi - lo, t_rows, lanes), o_ref.dtype)

    return kernel


def _choose_row_tile(rows, c_in, c_out, batch):
    """Pick the sublane-row tile and padded row count.

    Each grid step moves (c_in + c_out) * t_rows * 128 * 4 bytes through VMEM,
    double-buffered by the pipeline -> keep that under ~1/2 of physical VMEM.
    """
    try:
        vmem_cap = int(pltpu.get_tpu_info().vmem_capacity_bytes)
    except Exception:
        vmem_cap = 64 << 20  # conservative default (v7x has the smallest VMEM)

    bytes_per_row = (c_in + c_out) * 128 * 4
    budget_per_step = vmem_cap // 4          # x2 double-buffering -> <= cap / 2
    t_max = max(8, (budget_per_step // bytes_per_row) // 8 * 8)

    if rows <= t_max:
        t_rows, rows_pad = rows, rows        # full sublane extent: always legal
    else:
        t_rows = t_max                       # multiple of 8
        rows_pad = pl.cdiv(rows, t_rows) * t_rows

    # v7x shards the ("parallel","parallel") grid over 2 TensorCores; make sure
    # there are >=2 programs when the batch axis alone can't provide them.
    n_tiles = rows_pad // t_rows
    if batch * n_tiles < 2 and rows >= 16:
        t_rows = ((pl.cdiv(rows, 2) + 7) // 8) * 8
        rows_pad = pl.cdiv(rows, t_rows) * t_rows

    return t_rows, rows_pad, vmem_cap


def channel_pad(x, in_channels, out_channels):
    """x: (B, C_in, H, W) -> (B, out_channels, H, W), float32 (torch.zeros semantics)."""
    b, c, h, w = x.shape
    assert c == in_channels
    hw = h * w

    if in_channels == 0 or out_channels == 0 or hw == 0 or b == 0:
        return jnp.zeros((b, out_channels, h, w), jnp.float32)

    src_map = _build_channel_map(in_channels, out_channels)

    rows = pl.cdiv(hw, 128)
    t_rows, rows_pad, vmem_cap = _choose_row_tile(rows, in_channels, out_channels, b)
    hw_pad = rows_pad * 128
    n_tiles = rows_pad // t_rows

    # Free reshape (contiguous, no transpose); pad only if H*W isn't aligned.
    x_flat = x.reshape(b, in_channels, hw)
    if hw_pad != hw:
        x_flat = jnp.pad(x_flat, ((0, 0), (0, 0), (0, hw_pad - hw)))
    x4 = x_flat.reshape(b, in_channels, rows_pad, 128)

    out = pl.pallas_call(
        _make_channel_pad_kernel(src_map, out_channels),
        out_shape=jax.ShapeDtypeStruct((b, out_channels, rows_pad, 128), jnp.float32),
        grid=(b, n_tiles),
        in_specs=[
            pl.BlockSpec((1, in_channels, t_rows, 128),
                         lambda bi, ti: (bi, 0, ti, 0)),
        ],
        out_specs=pl.BlockSpec((1, out_channels, t_rows, 128),
                               lambda bi, ti: (bi, 0, ti, 0)),
        compiler_params=pltpu.CompilerParams(
            dimension_semantics=("parallel", "parallel"),
            vmem_limit_bytes=int(vmem_cap * 3 // 4),
        ),
    )(x4)

    out = out.reshape(b, out_channels, hw_pad)
    if hw_pad != hw:
        out = out[:, :, :hw]
    return out.reshape(b, out_channels, h, w)


def channel_pad_ref(x, in_channels, out_channels):
    """Pure-JAX reference matching the PyTorch forward."""
    b, _, h, w = x.shape
    result = jnp.zeros((b, out_channels, h, w), jnp.float32)
    if in_channels > 0:
        spacing = out_channels / in_channels
        indices = [int(i * spacing) for i in range(in_channels)]
    else:
        indices = []
    for i, idx in enumerate(indices):
        result = result.at[:, idx].set(x[:, i].astype(jnp.float32))
    return result


if __name__ == "__main__":
    B, C_IN, C_OUT, H, W = 2, 4, 6, 16, 16
    key = jax.random.PRNGKey(0)
    x = jax.random.normal(key, (B, C_IN, H, W), dtype=jnp.float32)

    y = channel_pad(x, C_IN, C_OUT)
    y = jax.block_until_ready(y)

    y_ref = channel_pad_ref(x, C_IN, C_OUT)
    np.testing.assert_allclose(np.asarray(y), np.asarray(y_ref), rtol=0, atol=0)
    assert y.shape == (B, C_OUT, H, W) and y.dtype == jnp.float32

    print("KERNEL_OK")
</pallas_src>

<mosaic_0001>
module attributes {stable_mosaic.version = 11 : i64} {
  func.func @kernel(%arg0: i32, %arg1: i32, %arg2: memref<1x4x2x128xf32, #tpu.memory_space<vmem>>, %arg3: memref<1x6x2x128xf32, #tpu.memory_space<vmem>>) attributes {dimension_semantics = [#tpu.dimension_semantics<parallel>, #tpu.dimension_semantics<parallel>], iteration_bounds = array<i64: 2, 1>, scalar_prefetch = 0 : i64, scratch_operands = 0 : i64, tpu.core_type = #tpu.core_type<tc>, window_params = [{transform_indices = @transform_0, window_bounds = array<i64: 1, 4, 2, 128>}, {transform_indices = @transform_1, window_bounds = array<i64: 1, 6, 2, 128>}]} {
    %c0 = arith.constant 0 : index
    %c0_0 = arith.constant 0 : index
    %c0_1 = arith.constant 0 : index
    %c0_2 = arith.constant 0 : index
    %0 = vector.load %arg2[%c0, %c0_0, %c0_1, %c0_2] : memref<1x4x2x128xf32, #tpu.memory_space<vmem>>, vector<1x1x2x128xf32>
    %1 = vector.shape_cast %0 : vector<1x1x2x128xf32> to vector<1x2x128xf32>
    %c0_3 = arith.constant 0 : index
    %c0_4 = arith.constant 0 : index
    %c0_5 = arith.constant 0 : index
    %c0_6 = arith.constant 0 : index
    %2 = vector.load %arg3[%c0_3, %c0_4, %c0_5, %c0_6] : memref<1x6x2x128xf32, #tpu.memory_space<vmem>>, vector<1x1x2x128xf32>
    %3 = vector.shape_cast %2 : vector<1x1x2x128xf32> to vector<1x2x128xf32>
    %4 = vector.shape_cast %1 : vector<1x2x128xf32> to vector<1x1x2x128xf32>
    tpu.vector_store %arg3[%c0_3, %c0_4, %c0_5, %c0_6], %4 {strides = array<i32>} : memref<1x6x2x128xf32, #tpu.memory_space<vmem>>, vector<1x1x2x128xf32>,
    %c0_7 = arith.constant 0 : index
    %c1 = arith.constant 1 : index
    %c0_8 = arith.constant 0 : index
    %c0_9 = arith.constant 0 : index
    %5 = vector.load %arg2[%c0_7, %c1, %c0_8, %c0_9] : memref<1x4x2x128xf32, #tpu.memory_space<vmem>>, vector<1x1x2x128xf32>
    %6 = vector.shape_cast %5 : vector<1x1x2x128xf32> to vector<1x2x128xf32>
    %c0_10 = arith.constant 0 : index
    %c1_11 = arith.constant 1 : index
    %c0_12 = arith.constant 0 : index
    %c0_13 = arith.constant 0 : index
    %7 = vector.load %arg3[%c0_10, %c1_11, %c0_12, %c0_13] : memref<1x6x2x128xf32, #tpu.memory_space<vmem>>, vector<1x1x2x128xf32>
    %8 = vector.shape_cast %7 : vector<1x1x2x128xf32> to vector<1x2x128xf32>
    %9 = vector.shape_cast %6 : vector<1x2x128xf32> to vector<1x1x2x128xf32>
    tpu.vector_store %arg3[%c0_10, %c1_11, %c0_12, %c0_13], %9 {strides = array<i32>} : memref<1x6x2x128xf32, #tpu.memory_space<vmem>>, vector<1x1x2x128xf32>,
    %cst = arith.constant 0.000000e+00 : f32
    %10 = vector.broadcast %cst : f32 to vector<1x1x2x128xf32>
    %c0_14 = arith.constant 0 : index
    %c2 = arith.constant 2 : index
    %c0_15 = arith.constant 0 : index
    %c0_16 = arith.constant 0 : index
    %11 = vector.load %arg3[%c0_14, %c2, %c0_15, %c0_16] : memref<1x6x2x128xf32, #tpu.memory_space<vmem>>, vector<1x1x2x128xf32>
    tpu.vector_store %arg3[%c0_14, %c2, %c0_15, %c0_16], %10 {strides = array<i32>} : memref<1x6x2x128xf32, #tpu.memory_space<vmem>>, vector<1x1x2x128xf32>,
    %c0_17 = arith.constant 0 : index
    %c2_18 = arith.constant 2 : index
    %c0_19 = arith.constant 0 : index
    %c0_20 = arith.constant 0 : index
    %12 = vector.load %arg2[%c0_17, %c2_18, %c0_19, %c0_20] : memref<1x4x2x128xf32, #tpu.memory_space<vmem>>, vector<1x1x2x128xf32>
    %13 = vector.shape_cast %12 : vector<1x1x2x128xf32> to vector<1x2x128xf32>
    %c0_21 = arith.constant 0 : index
    %c3 = arith.constant 3 : index
    %c0_22 = arith.constant 0 : index
    %c0_23 = arith.constant 0 : index
    %14 = vector.load %arg3[%c0_21, %c3, %c0_22, %c0_23] : memref<1x6x2x128xf32, #tpu.memory_space<vmem>>, vector<1x1x2x128xf32>
    %15 = vector.shape_cast %14 : vector<1x1x2x128xf32> to vector<1x2x128xf32>
    %16 = vector.shape_cast %13 : vector<1x2x128xf32> to vector<1x1x2x128xf32>
    tpu.vector_store %arg3[%c0_21, %c3, %c0_22, %c0_23], %16 {strides = array<i32>} : memref<1x6x2x128xf32, #tpu.memory_space<vmem>>, vector<1x1x2x128xf32>,
    %c0_24 = arith.constant 0 : index
    %c3_25 = arith.constant 3 : index
    %c0_26 = arith.constant 0 : index
    %c0_27 = arith.constant 0 : index
    %17 = vector.load %arg2[%c0_24, %c3_25, %c0_26, %c0_27] : memref<1x4x2x128xf32, #tpu.memory_space<vmem>>, vector<1x1x2x128xf32>
    %18 = vector.shape_cast %17 : vector<1x1x2x128xf32> to vector<1x2x128xf32>
    %c0_28 = arith.constant 0 : index
    %c4 = arith.constant 4 : index
    %c0_29 = arith.constant 0 : index
    %c0_30 = arith.constant 0 : index
    %19 = vector.load %arg3[%c0_28, %c4, %c0_29, %c0_30] : memref<1x6x2x128xf32, #tpu.memory_space<vmem>>, vector<1x1x2x128xf32>
    %20 = vector.shape_cast %19 : vector<1x1x2x128xf32> to vector<1x2x128xf32>
    %21 = vector.shape_cast %18 : vector<1x2x128xf32> to vector<1x1x2x128xf32>
    tpu.vector_store %arg3[%c0_28, %c4, %c0_29, %c0_30], %21 {strides = array<i32>} : memref<1x6x2x128xf32, #tpu.memory_space<vmem>>, vector<1x1x2x128xf32>,
    %cst_31 = arith.constant 0.000000e+00 : f32
    %22 = vector.broadcast %cst_31 : f32 to vector<1x1x2x128xf32>
    %c0_32 = arith.constant 0 : index
    %c5 = arith.constant 5 : index
    %c0_33 = arith.constant 0 : index
    %c0_34 = arith.constant 0 : index
    %23 = vector.load %arg3[%c0_32, %c5, %c0_33, %c0_34] : memref<1x6x2x128xf32, #tpu.memory_space<vmem>>, vector<1x1x2x128xf32>
    tpu.vector_store %arg3[%c0_32, %c5, %c0_33, %c0_34], %22 {strides = array<i32>} : memref<1x6x2x128xf32, #tpu.memory_space<vmem>>, vector<1x1x2x128xf32>,
    return
  }
  func.func @transform_0(%arg0: i32, %arg1: i32) -> (i32, i32, i32, i32) {
    %c0_i32 = arith.constant 0 : i32
    %c0_i32_0 = arith.constant 0 : i32
    %c0_i32_1 = arith.constant 0 : i32
    return %arg0, %c0_i32, %arg1, %c0_i32_0 : i32, i32, i32, i32
  }
  func.func @transform_1(%arg0: i32, %arg1: i32) -> (i32, i32, i32, i32) {
    %c0_i32 = arith.constant 0 : i32
    %c0_i32_0 = arith.constant 0 : i32
    %c0_i32_1 = arith.constant 0 : i32
    return %arg0, %c0_i32, %arg1, %c0_i32_0 : i32, i32, i32, i32
  }
}

</mosaic_0001>

<bundles_post_ra>
// kernel: tpu_custom_call.1
= control target key start
LH: loop header
LB: loop body
LE: loop exit
PB: predicated region body
PF: predicated region fallthrough
CT: control target
= control target key end

     0   :  { %6 = vsyncpa [#allocation3], 0  ;;  %s667_s0 = inlined_call_operand.hbm [shape: f32[2,4,2,128], index: 0, kind: input, shape index: {}]   ;;  %s668_s1 = inlined_call_operand.hbm [shape: f32[2,6,2,128], index: 1, kind: output, shape index: {}]  }
   0x1   :  { %8 = vsyncpa [#allocation3 + $0x1], 0 }
   0x2   :  { %9 = vsyncpa [#allocation4], 0 }
   0x3   :  { %11 = vsyncpa [#allocation4 + $0x1], 0  ;;  %s491_s6 = smov 0   ;;  %s493_s7 = smov 0  }
   0x4   :  { %s495_s8 = smov 0   ;;  %s497_s9 = smov 0  }
   0x5   :  { %s499_s10 = smov 0   ;;  %s501_s11 = smov 0  }
   0x6 LB: > { %s270_s12 = sadd.s32 4294967295, %s472_s11   ;;  %s271_s13 = sadd.s32 4294967294, %s472_s11   ;;  %s472_s11 = sphi %s501_s11, %s17_s11   ;;  %s468_s10 = sphi %s499_s10, %s683_s10   ;;  %s464_s9 = sphi %s497_s9, %s682_s9   ;;  %s460_s8 = sphi %s495_s8, %s681_s8   ;;  %s456_s7 = sphi %s493_s7, %s680_s7   ;;  %s452_s6 = sphi %s491_s6, %s679_s6  }
   0x7   : > { %s29_s14 = sadd.s32 1, %s468_s10  ;;  %s38_s15 = sadd.s32 1, %s460_s8 }
   0x8   : > { %p31_p0 = scmp.ge.s32.totalorder %s29_s14, 2  ;;  %p45_p1 = scmp.ne.s32.totalorder %s460_s8, %s456_s7 }
   0x9   : > { %p46_p2 = scmp.eq.s32.totalorder %s472_s11, 0  ;;  %p51_p3 = scmp.ne.s32.totalorder %s456_s7, %s452_s6 }
   0xa   : > { %s685_s14 = smov (%p31_p0, %s29_s14), 0  ;;  %p52_p5 = scmp.eq.s32.totalorder %s270_s12, 0 }
   0xb   : > { %p532_p4 = por %p46_p2, %p45_p1  ;;  %s33_s17 = ssub.s32 %s468_s10, %s685_s14 }
   0xc   : > { %p77_p6 = scmp.eq.s32.totalorder %s270_s12, 1  ;;  %p36_p7 = scmp.eq.s32.totalorder %s33_s17, 0 }
   0xd   : > { %p538_p8 = por %p52_p5, %p51_p3  ;;  %p83_p10 = scmp.eq.s32.totalorder %s271_s13, 1 }
   0xe   : > { %p542_p9 = por %p77_p6, %p45_p1  ;;  %p305_p13 = scmp.lt.s32.totalorder %s472_s11, 2 }
   0xf   : > { %s547_s20 = scalar_select %p36_p7, %s460_s8, %s38_s15  }
  0x10   : > { %s672_s19 = scalar_select %p542_p9, 1, 0 }
  0x11   : > { %p549_p11 = por %p83_p10, %p51_p3  ;;  %s103_s22 = sand.u32 1, %s460_s8  }
  0x12   : > { %s274_s23 = sshll.u32 %s103_s22, 3  ;;  %s290_s24 = sshll.u32 %s468_s10, 7 }
  0x13   : > { %s673_s21 = scalar_select %p549_p11, 1, 0 }
  0x14   : > { %s560_s27 = scalar_lea.hbm %s667_s0, %s290_s24  ;;  %s107_s28 = scalar_lea.vmem [#allocation2], %s274_s23 }
  0x15   : > { %s115_s29 = sshll.u32 %s107_s28, 4  ;;  %p566_p0 = pnand %p305_p13, %p532_p4  ;;  %s562_s29 = int_to_ptr.vmem [resolvable:$true] %s115_s29 }
  0x16   : > { %s571_s2 = scalar_lea.sflag [#allocation3], %s103_s22  ;;  %s360_s3 = scalar_lea.hbm %s560_s27, 128 }
  0x17   : > { %p361_p2 = scmp.ne.s32.totalorder %s560_s27, %s360_s3  ;;  %p362_p3 = pneg %p566_p0 }
  0x18   : > { %s365_s12 = scalar_lea.hbm %s667_s0, 256  ;;  %p366_p4 = scmp.lt.u32.totalorder %s560_s27, %s667_s0 }
  0x19   : > { %p363_p5 = pnand %p362_p3, %p361_p2  ;;  %p367_p7 = scmp.lt.u32.totalorder %s365_s12, %s360_s3 }
  0x1a   : > { %p369_p13 = scmp.lt.u32.totalorder %s360_s3, %s560_s27 }
  0x1b   : > { %p364_p6 = pneg %p363_p5  ;;  %p368_p10 = por %p367_p7, %p366_p4 }
  0x1d   : > { %p370_p12 = por %p369_p13, %p368_p10 }
  0x1f   : > { %p371_p1 = pnand %p370_p12, %p364_p6 }
  0x21   : > { %374 = shalt.err (!%p371_p1)
}
  0x22   : > { %s375_s16 = scalar_lea.vmem %s562_s29, 128  ;;  %s474_s17 = smov [#allocation2]  }
  0x23   : > { %p376_p2 = scmp.ne.s32.totalorder %s562_s29, %s375_s16  ;;  %s380_s22 = sshll.u32 %s474_s17, 4  ;;  %s381_s22 = int_to_ptr.vmem [resolvable:$false] %s380_s22 }
  0x24   : > { %s382_s23 = scalar_lea.vmem %s381_s22, 256  ;;  %p383_p9 = scmp.lt.s32.totalorder %s562_s29, %s381_s22 }
  0x25   : > { %p378_p5 = pnand %p376_p2, %p362_p3  ;;  %p384_p4 = scmp.lt.s32.totalorder %s382_s23, %s375_s16 }
  0x27   : > { %p379_p11 = pneg %p378_p5  ;;  %p385_p7 = por %p384_p4, %p383_p9 }
  0x29   : > { %p386_p10 = pnand %p385_p7, %p379_p11 }
  0x2b   : > { %389 = shalt.err (!%p386_p10)
}
  0x2c   : > { %s475_s24 = smov 32   ;;  %s476_s25 = smov 2  }
  0x2d   : > { %300 = dma.hbm_to_vmem [thread:$0]  (!%p566_p0), %s560_s27, 128, %s562_s29, %s571_s2, %s475_s24, %s475_s24, %s476_s25  }
  0x2e   : > { %p123_p12 = scmp.lt.s32.totalorder %s472_s11, 3  ;;  %p675_p1 = scmp.ge.s32.totalorder %s472_s11, 1 }
  0x30   : > { %p124_p3 = pnand %p675_p1, %p123_p12 }
  0x31   : > { %s603_s26 = sand.u32 (!%p124_p3), 1, %s456_s7  }
  0x32   : > { %127 = sbr.rel (%p124_p3) target bundleno = 85 (0x55), region = 24  ;;  %s278_s28 = sshll.u32 (!%p124_p3), %s603_s26, 3 }
  0x33   : > { %s130_s3 = scalar_lea.sflag (!%p124_p3), [#allocation3], %s603_s26  ;;  %s133_s4 = scalar_lea.vmem (!%p124_p3), [#allocation2], %s278_s28 }
  0x39   : > { %443 = dma.done.wait (%p538_p8), %s130_s3, 128  }
  0x3a   : > { %445 = vsyncadd (%p538_p8), %s130_s3, 4294967168  ;;  %s291_s27 = smul.u32 12, %s603_s26  ;;  %v477_v0 = vmov 0.0   ;;  %v152_v1 = vld [vmem:[%s133_s4] sm:$0xf]   ;;  %p676_p9 = scmp.ne.s32.totalorder %s672_s19, 0 }
  0x3b   : > { %s292_s29 = smul.u32 192, %s464_s9  ;;  %v282_v2 = vld [vmem:[%s133_s4 + $0x4] sm:$0xf]   ;;  %s171_s9 = scalar_lea.sflag [#allocation4], %s603_s26 }
  0x3c   : > { %s151_s30 = scalar_lea.vmem [#allocation5], %s291_s27  ;;  %s478_s15 = smov [#allocation5]  }
  0x3d   : > { %s185_s2 = sshll.u32 %s151_s30, 4  ;;  %281 = vst [vmem:[%s151_s30 + $0x4] sm:$0x3] %v477_v0  ;;  %286 = vst [vmem:[%s151_s30 + $0xa] sm:$0x3] %v477_v0  ;;  %s618_s18 = scalar_lea.hbm %s668_s1, %s292_s29  ;;  %s613_s2 = int_to_ptr.vmem [resolvable:$true] %s185_s2 }
  0x3e   : > { %153 = vst [vmem:[%s151_s30] sm:$0xf] %v152_v1   ;;  %283 = vst [vmem:[%s151_s30 + $0x6] sm:$0xf] %v282_v2   ;;  %s390_s13 = scalar_lea.vmem %s613_s2, 192  ;;  %s394_s16 = sshll.u32 %s478_s15, 4  ;;  %s395_s16 = int_to_ptr.vmem [resolvable:$false] %s394_s16 }
  0x3f   : > { %p391_p8 = scmp.ne.s32.totalorder %s613_s2, %s390_s13  ;;  %s396_s17 = scalar_lea.vmem %s395_s16, 384 }
  0x40   : > { %p397_p6 = scmp.lt.s32.totalorder %s613_s2, %s395_s16  ;;  %p398_p13 = scmp.lt.s32.totalorder %s396_s17, %s390_s13 }
  0x41   : > { %p392_p11 = pnand %p391_p8, %p676_p9 }
  0x42   : > { %p399_p2 = por %p398_p13, %p397_p6 }
  0x43   : > { %p393_p0 = pneg %p392_p11 }
  0x45   : > { %p400_p5 = pnand %p399_p2, %p393_p0 }
  0x47   : > { %403 = shalt.err (!%p400_p5)
}
  0x48   : > { %s404_s22 = scalar_lea.hbm %s618_s18, 192  ;;  %s408_s25 = scalar_lea.hbm %s668_s1, 384 }
  0x49   : > { %p405_p4 = scmp.ne.s32.totalorder %s618_s18, %s404_s22  ;;  %p409_p12 = scmp.lt.u32.totalorder %s618_s18, %s668_s1 }
  0x4a   : > { %p410_p1 = scmp.lt.u32.totalorder %s408_s25, %s404_s22  ;;  %p412_p8 = scmp.lt.u32.totalorder %s404_s22, %s618_s18 }
  0x4b   : > { %p406_p7 = pnand %p405_p4, %p676_p9 }
  0x4c   : > { %p411_p3 = por %p410_p1, %p409_p12 }
  0x4d   : > { %p407_p10 = pneg %p406_p7 }
  0x4e   : > { %p413_p11 = por %p412_p8, %p411_p3 }
  0x50   : > { %p414_p0 = pnand %p413_p11, %p407_p10 }
  0x52   : > { %417 = shalt.err (!%p414_p0)
}
  0x53   : > { %s479_s4 = smov 32   ;;  %s480_s27 = smov 2  }
  0x54   : > { %295 = dma.vmem_to_hbm [thread:$0]  (%p676_p9), %s613_s2, 192, %s618_s18, %s171_s9, %s479_s4, %s479_s4, %s480_s27  }
  0x55 PF: > { %s200_s29 = sand.u32 1, %s452_s6   ;;  %p677_p6 = scmp.ne.s32.totalorder %s673_s21, 0 }
  0x56   : > { %p678_p13 = scmp.ge.s32.totalorder %s472_s11, 2  ;;  %s201_s30 = scalar_lea.sflag [#allocation4], %s200_s29 }
  0x58   : > { %p302_p2 = pnand %p678_p13, %p677_p6 }
  0x5a   : > { %447 = dma.done.wait (!%p302_p2), %s201_s30, 192  }
  0x5b   : > { %449 = vsyncadd (!%p302_p2), %s201_s30, 4294967104  ;;  %s17_s11 = sadd.s32 1, %s472_s11   ;;  %s679_s6 = smov %s456_s7 }
  0x5c   : > { %p14_p5 = scmp.ge.s32.totalorder %s17_s11, 4   ;;  %s680_s7 = smov %s460_s8 }
  0x5d   : > { %s681_s8 = smov %s547_s20  ;;  %s682_s9 = smov %s468_s10 }
  0x5e   : > { %s683_s10 = smov %s685_s14  ;;  %16 = sbr.rel (!%p14_p5) target bundleno = 6 (0x6), region = 77 }
  0x65   :  { %206 = vsyncpa [#allocation3], 1 }
  0x66   :  { %208 = vsyncpa [#allocation3 + $0x1], 1 }
  0x67   :  { %209 = vsyncpa [#allocation4], 1 }
  0x68   :  { %211 = vsyncpa [#allocation4 + $0x1], 1 }

</bundles_post_ra>
